<compile_context>
chip_gen: v5e
topology: v5e:2x2
jax: 0.10.0
libtpu: 0.0.40
codegen_flags: <defaults>
</compile_context>

<pallas_src>
import jax
import jax.numpy as jnp
from jax.experimental import pallas as pl
from jax.experimental.pallas import tpu as pltpu


def _make_tv_kernel(use_roll: bool):
    """Build the TV kernel body; `use_roll` is a static layout decision."""

    def kernel(x_ref, htv_ref, wtv_ref, htv_s, wtv_s):
        j = pl.program_id(1)  # reduction axis: plane blocks within this shard

        @pl.when(j == 0)
        def _():
            htv_s[...] = jnp.zeros_like(htv_s)
            wtv_s[...] = jnp.zeros_like(wtv_s)

        # Keep native dtype through the DMA; widen to f32 only for the math.
        x = x_ref[...].astype(jnp.float32)          # (TB, H, W)
        tb, h, w = x.shape                          # static Python ints

        if use_roll:
            # 2-D view: collapsing (TB, H) is layout-preserving because the
            # roll path requires h % 8 == 0 and w % 128 == 0 (whole vreg rows).
            x2 = x.reshape(tb * h, w)
            # Row index within each plane (0..h-1), reshaped alongside x2; the
            # rows with in-plane index 0 are wrap-around / plane-boundary diffs.
            row = jax.lax.broadcasted_iota(jnp.int32, (tb, h, w), 1).reshape(tb * h, w)
            col = jax.lax.broadcasted_iota(jnp.int32, (tb * h, w), 1)

            dh = jnp.where(row >= 1, x2 - pltpu.roll(x2, 1, axis=0), 0.0)
            dw = jnp.where(col >= 1, x2 - pltpu.roll(x2, 1, axis=1), 0.0)

            # Lane-resident (1, W) partial sums: cross-vreg VPU adds + one
            # sublane reduce per step; no narrow stores, no cross-lane reduce.
            htv_s[...] += jnp.sum(dh * dh, axis=0, keepdims=True)   # (1, W)
            wtv_s[...] += jnp.sum(dw * dw, axis=0, keepdims=True)   # (1, W)
        else:
            # Fallback for planes that are not (8,128)-aligned (same math as v2).
            if h >= 2:
                dh = x[:, 1:, :] - x[:, :-1, :]                     # (TB, H-1, W)
                htv_s[...] += jnp.sum(jnp.sum(dh * dh, axis=0), axis=0,
                                      keepdims=True)                # (1, W)
            if w >= 2:
                dw = x[:, :, 1:] - x[:, :, :-1]                     # (TB, H, W-1)
                wtv_s[...] += jnp.sum(jnp.sum(dw * dw, axis=0), axis=0,
                                      keepdims=True)                # (1, W-1)

        # Cross-lane reduction + the two (1,1) stores happen once per shard.
        @pl.when(j == pl.num_programs(1) - 1)
        def _():
            htv_ref[...] = jnp.sum(htv_s[...], keepdims=True)       # (1, 1)
            wtv_ref[...] = jnp.sum(wtv_s[...], keepdims=True)       # (1, 1)

    return kernel


def _num_tensorcores_per_chip() -> int:
    """Best effort: only v7x-class chips expose 2 TensorCores per chip."""
    try:
        kind = str(getattr(jax.devices()[0], "device_kind", "")).lower()
    except Exception:
        return 1
    return 2 if ("v7" in kind or "7x" in kind) else 1


def _largest_divisor_leq(n: int, cap: int) -> int:
    cap = max(1, min(n, cap))
    for d in range(cap, 0, -1):
        if n % d == 0:
            return d
    return 1


def tv_loss(x, tv_loss_weight=1.0, *, target_block_bytes=4 * 1024 * 1024):
    """Pallas TPU implementation of the PyTorch `TV` module forward (NCHW)."""
    n, c, h, w = x.shape
    count_h = (h - 1) * w
    count_w = h * (w - 1)

    p = n * c
    itemsize = jnp.dtype(x.dtype).itemsize
    plane_native = h * w * itemsize
    plane_f32 = h * w * 4

    # Roll+mask path only for tile-aligned planes; otherwise slice fallback.
    use_roll = (h % 8 == 0) and (w % 128 == 0)

    # Per-plane VMEM working set: 2x double-buffered native input block plus a
    # generous ~6x f32 for the widened intermediates (cast, rolls/diffs, squares).
    per_plane_ws = 2 * plane_native + 6 * plane_f32
    ws_budget = 40 * 1024 * 1024
    tb_cap = max(1, min(target_block_bytes // max(plane_native, 1),
                        ws_budget // max(per_plane_ws, 1)))
    # TODO(synk): planes whose own working set exceeds VMEM (e.g. 4k x 4k f32 on
    # v7x's 64 MiB) need an H-tiled block with a carried boundary row.

    # Megacore shard axis only on 2-TC chips and only if it splits evenly
    # (no padding, no wasted zero-block DMAs on single-TC v5e/v6e).
    num_shards = 2 if (_num_tensorcores_per_chip() >= 2 and p % 2 == 0) else 1
    p_shard = p // num_shards
    # Largest divisor of the per-shard plane count that fits the block budget
    # -> exact tiling: no jnp.pad and no in-kernel tail masking.
    tb = _largest_divisor_leq(p_shard, tb_cap)
    nb_per_shard = p_shard // tb

    x_flat = x.reshape(p, h, w)

    est_vmem = tb * per_plane_ws + (2 << 20)
    vmem_limit = int(min(48 * 1024 * 1024, max(16 * 1024 * 1024, 2 * est_vmem)))

    cost = pl.CostEstimate(
        flops=6 * p * h * w,
        transcendentals=0,
        bytes_accessed=p * h * w * itemsize + 2 * num_shards * 4,
    )

    wtv_scratch_w = w if use_roll else max(w - 1, 1)

    h_parts, w_parts = pl.pallas_call(
        _make_tv_kernel(use_roll),
        out_shape=(
            jax.ShapeDtypeStruct((num_shards, 1, 1), jnp.float32),
            jax.ShapeDtypeStruct((num_shards, 1, 1), jnp.float32),
        ),
        grid_spec=pltpu.PrefetchScalarGridSpec(
            num_scalar_prefetch=0,
            grid=(num_shards, nb_per_shard),
            in_specs=[
                # Whole (H, W) planes per block: last two dims equal the full
                # array dims, so any H/W is a legal block shape.
                pl.BlockSpec(
                    (tb, h, w),
                    lambda s, j: (s * nb_per_shard + j, 0, 0),
                )
            ],
            out_specs=(
                pl.BlockSpec((None, 1, 1), lambda s, j: (s, 0, 0)),
                pl.BlockSpec((None, 1, 1), lambda s, j: (s, 0, 0)),
            ),
            scratch_shapes=[
                pltpu.VMEM((1, w), jnp.float32),
                pltpu.VMEM((1, wtv_scratch_w), jnp.float32),
            ],
        ),
        compiler_params=pltpu.CompilerParams(
            # TODO(synk): on v7x, verify in the trace that this axis actually
            # splits across both TensorCores; switch to pltpu.CORE_PARALLEL if
            # one core sits idle.
            dimension_semantics=("parallel", "arbitrary"),
            vmem_limit_bytes=vmem_limit,
        ),
        cost_estimate=cost,
    )(x_flat)

    h_tv = jnp.sum(h_parts)
    w_tv = jnp.sum(w_parts)
    return tv_loss_weight * 2.0 * (h_tv / count_h + w_tv / count_w) / n


def tv_loss_ref(x, tv_loss_weight=1.0):
    """Pure-JAX reference (mirrors the PyTorch forward exactly)."""
    n, c, h, w = x.shape
    count_h = (h - 1) * w
    count_w = h * (w - 1)
    x = x.astype(jnp.float32)
    h_tv = jnp.sum((x[:, :, 1:, :] - x[:, :, :-1, :]) ** 2)
    w_tv = jnp.sum((x[:, :, :, 1:] - x[:, :, :, :-1]) ** 2)
    return tv_loss_weight * 2.0 * (h_tv / count_h + w_tv / count_w) / n


if __name__ == "__main__":
    key = jax.random.PRNGKey(0)
    k1, k2 = jax.random.split(key)

    # Aligned planes -> exercises the roll+mask (XLU) fast path.
    x_aligned = jax.random.normal(k1, (2, 4, 16, 128), dtype=jnp.float32)
    out = jax.block_until_ready(tv_loss(x_aligned, tv_loss_weight=1.0))
    ref = jax.block_until_ready(tv_loss_ref(x_aligned, tv_loss_weight=1.0))
    assert jnp.allclose(out, ref, rtol=1e-5, atol=1e-5), (out, ref)

    # Small unaligned planes -> exercises the shifted-slice fallback path.
    x_small = jax.random.normal(k2, (2, 4, 16, 16), dtype=jnp.float32)
    out2 = jax.block_until_ready(tv_loss(x_small, tv_loss_weight=1.0))
    ref2 = jax.block_until_ready(tv_loss_ref(x_small, tv_loss_weight=1.0))
    assert jnp.allclose(out2, ref2, rtol=1e-5, atol=1e-5), (out2, ref2)

    print("KERNEL_OK")
</pallas_src>

<mosaic_0001>
module attributes {stable_mosaic.version = 11 : i64} {
  func.func @kernel(%arg0: i32, %arg1: i32, %arg2: memref<8x16x128xf32, #tpu.memory_space<vmem>>, %arg3: memref<1x1x1xf32, #tpu.memory_space<vmem>>, %arg4: memref<1x1x1xf32, #tpu.memory_space<vmem>>, %arg5: memref<1x128xf32, #tpu.memory_space<vmem>>, %arg6: memref<1x128xf32, #tpu.memory_space<vmem>>) attributes {dimension_semantics = [#tpu.dimension_semantics<parallel>, #tpu.dimension_semantics<arbitrary>], iteration_bounds = array<i64: 1, 1>, scalar_prefetch = 0 : i64, scratch_operands = 2 : i64, tpu.core_type = #tpu.core_type<tc>, window_params = [{transform_indices = @transform_0, window_bounds = array<i64: 8, 16, 128>}, {transform_indices = @transform_1, window_bounds = array<i64: 1, 1, 1>}, {transform_indices = @transform_2, window_bounds = array<i64: 1, 1, 1>}]} {
    %c0_i32 = arith.constant 0 : i32
    %0 = arith.cmpi eq, %arg1, %c0_i32 : i32
    %1 = arith.extui %0 : i1 to i32
    %c0_i32_0 = arith.constant 0 : i32
    %2 = arith.cmpi ne, %1, %c0_i32_0 : i32
    scf.if %2 {
      %cst_19 = arith.constant 0.000000e+00 : f32
      %35 = vector.broadcast %cst_19 : f32 to vector<1x128xf32>
      %c0_20 = arith.constant 0 : index
      %c0_21 = arith.constant 0 : index
      %36 = vector.load %arg5[%c0_20, %c0_21] : memref<1x128xf32, #tpu.memory_space<vmem>>, vector<1x128xf32>
      tpu.vector_store %arg5[%c0_20, %c0_21], %35 {strides = array<i32>} : memref<1x128xf32, #tpu.memory_space<vmem>>, vector<1x128xf32>,
      %cst_22 = arith.constant 0.000000e+00 : f32
      %37 = vector.broadcast %cst_22 : f32 to vector<1x128xf32>
      %c0_23 = arith.constant 0 : index
      %c0_24 = arith.constant 0 : index
      %38 = vector.load %arg6[%c0_23, %c0_24] : memref<1x128xf32, #tpu.memory_space<vmem>>, vector<1x128xf32>
      tpu.vector_store %arg6[%c0_23, %c0_24], %37 {strides = array<i32>} : memref<1x128xf32, #tpu.memory_space<vmem>>, vector<1x128xf32>,
    } else {
    }
    %c0 = arith.constant 0 : index
    %c0_1 = arith.constant 0 : index
    %c0_2 = arith.constant 0 : index
    %3 = vector.load %arg2[%c0, %c0_1, %c0_2] : memref<8x16x128xf32, #tpu.memory_space<vmem>>, vector<8x16x128xf32>
    %4 = vector.shape_cast %3 : vector<8x16x128xf32> to vector<128x128xf32>
    %5 = tpu.iota {dimensions = array<i32: 1>} : vector<8x16x128xi32>
    %6 = vector.shape_cast %5 : vector<8x16x128xi32> to vector<128x128xi32>
    %7 = tpu.iota {dimensions = array<i32: 1>} : vector<128x128xi32>
    %c1_i32 = arith.constant 1 : i32
    %8 = vector.broadcast %c1_i32 : i32 to vector<128x128xi32>
    %9 = arith.cmpi sge, %6, %8 : vector<128x128xi32>
    %c1_i32_3 = arith.constant 1 : i32
    %10 = tpu.dynamic_rotate %4 by %c1_i32_3 dim 0 : vector<128x128xf32>, i32 -> vector<128x128xf32>
    %11 = arith.subf %4, %10 : vector<128x128xf32>
    %cst = arith.constant 0.000000e+00 : f32
    %12 = vector.broadcast %cst : f32 to vector<128x128xf32>
    %13 = arith.select %9, %11, %12 : vector<128x128xi1>, vector<128x128xf32>
    %c1_i32_4 = arith.constant 1 : i32
    %14 = vector.broadcast %c1_i32_4 : i32 to vector<128x128xi32>
    %15 = arith.cmpi sge, %7, %14 : vector<128x128xi32>
    %c1_i32_5 = arith.constant 1 : i32
    %16 = tpu.dynamic_rotate %4 by %c1_i32_5 dim 1 : vector<128x128xf32>, i32 -> vector<128x128xf32>
    %17 = arith.subf %4, %16 : vector<128x128xf32>
    %cst_6 = arith.constant 0.000000e+00 : f32
    %18 = vector.broadcast %cst_6 : f32 to vector<128x128xf32>
    %19 = arith.select %15, %17, %18 : vector<128x128xi1>, vector<128x128xf32>
    %c0_7 = arith.constant 0 : index
    %c0_8 = arith.constant 0 : index
    %20 = vector.load %arg5[%c0_7, %c0_8] : memref<1x128xf32, #tpu.memory_space<vmem>>, vector<1x128xf32>
    %21 = arith.mulf %13, %13 : vector<128x128xf32>
    %cst_9 = arith.constant dense<0.000000e+00> : vector<128xf32>
    %22 = vector.multi_reduction <add>, %21, %cst_9 [0] : vector<128x128xf32> to vector<128xf32>
    %23 = vector.shape_cast %22 : vector<128xf32> to vector<1x128xf32>
    %24 = arith.addf %20, %23 : vector<1x128xf32>
    %c0_10 = arith.constant 0 : index
    %c0_11 = arith.constant 0 : index
    %25 = vector.load %arg5[%c0_10, %c0_11] : memref<1x128xf32, #tpu.memory_space<vmem>>, vector<1x128xf32>
    tpu.vector_store %arg5[%c0_10, %c0_11], %24 {strides = array<i32>} : memref<1x128xf32, #tpu.memory_space<vmem>>, vector<1x128xf32>,
    %c0_12 = arith.constant 0 : index
    %c0_13 = arith.constant 0 : index
    %26 = vector.load %arg6[%c0_12, %c0_13] : memref<1x128xf32, #tpu.memory_space<vmem>>, vector<1x128xf32>
    %27 = arith.mulf %19, %19 : vector<128x128xf32>
    %cst_14 = arith.constant dense<0.000000e+00> : vector<128xf32>
    %28 = vector.multi_reduction <add>, %27, %cst_14 [0] : vector<128x128xf32> to vector<128xf32>
    %29 = vector.shape_cast %28 : vector<128xf32> to vector<1x128xf32>
    %30 = arith.addf %26, %29 : vector<1x128xf32>
    %c0_15 = arith.constant 0 : index
    %c0_16 = arith.constant 0 : index
    %31 = vector.load %arg6[%c0_15, %c0_16] : memref<1x128xf32, #tpu.memory_space<vmem>>, vector<1x128xf32>
    tpu.vector_store %arg6[%c0_15, %c0_16], %30 {strides = array<i32>} : memref<1x128xf32, #tpu.memory_space<vmem>>, vector<1x128xf32>,
    %c0_i32_17 = arith.constant 0 : i32
    %32 = arith.cmpi eq, %arg1, %c0_i32_17 : i32
    %33 = arith.extui %32 : i1 to i32
    %c0_i32_18 = arith.constant 0 : i32
    %34 = arith.cmpi ne, %33, %c0_i32_18 : i32
    scf.if %34 {
      %c0_19 = arith.constant 0 : index
      %c0_20 = arith.constant 0 : index
      %35 = vector.load %arg5[%c0_19, %c0_20] : memref<1x128xf32, #tpu.memory_space<vmem>>, vector<1x128xf32>
      %36 = vector.shape_cast %35 : vector<1x128xf32> to vector<1x1x128xf32>
      %cst_21 = arith.constant dense<0.000000e+00> : vector<1xf32>
      %37 = vector.multi_reduction <add>, %36, %cst_21 [1, 2] : vector<1x1x128xf32> to vector<1xf32>
      %38 = vector.shape_cast %37 : vector<1xf32> to vector<1x1x1xf32>
      %39 = vector.extract %38[0, 0, 0] : f32 from vector<1x1x1xf32>
      %40 = vector.broadcast %39 : f32 to vector<1x1xf32>
      %c0_22 = arith.constant 0 : index
      %c0_23 = arith.constant 0 : index
      %c0_24 = arith.constant 0 : index
      %41 = vector.load %arg3[%c0_22, %c0_23, %c0_24] : memref<1x1x1xf32, #tpu.memory_space<vmem>>, vector<1x1x1xf32>
      %42 = vector.shape_cast %41 : vector<1x1x1xf32> to vector<1x1xf32>
      %43 = vector.shape_cast %40 : vector<1x1xf32> to vector<1x1x1xf32>
      tpu.vector_store %arg3[%c0_22, %c0_23, %c0_24], %43 {strides = array<i32>} : memref<1x1x1xf32, #tpu.memory_space<vmem>>, vector<1x1x1xf32>,
      %c0_25 = arith.constant 0 : index
      %c0_26 = arith.constant 0 : index
      %44 = vector.load %arg6[%c0_25, %c0_26] : memref<1x128xf32, #tpu.memory_space<vmem>>, vector<1x128xf32>
      %45 = vector.shape_cast %44 : vector<1x128xf32> to vector<1x1x128xf32>
      %cst_27 = arith.constant dense<0.000000e+00> : vector<1xf32>
      %46 = vector.multi_reduction <add>, %45, %cst_27 [1, 2] : vector<1x1x128xf32> to vector<1xf32>
      %47 = vector.shape_cast %46 : vector<1xf32> to vector<1x1x1xf32>
      %48 = vector.extract %47[0, 0, 0] : f32 from vector<1x1x1xf32>
      %49 = vector.broadcast %48 : f32 to vector<1x1xf32>
      %c0_28 = arith.constant 0 : index
      %c0_29 = arith.constant 0 : index
      %c0_30 = arith.constant 0 : index
      %50 = vector.load %arg4[%c0_28, %c0_29, %c0_30] : memref<1x1x1xf32, #tpu.memory_space<vmem>>, vector<1x1x1xf32>
      %51 = vector.shape_cast %50 : vector<1x1x1xf32> to vector<1x1xf32>
      %52 = vector.shape_cast %49 : vector<1x1xf32> to vector<1x1x1xf32>
      tpu.vector_store %arg4[%c0_28, %c0_29, %c0_30], %52 {strides = array<i32>} : memref<1x1x1xf32, #tpu.memory_space<vmem>>, vector<1x1x1xf32>,
    } else {
    }
    return
  }
  func.func @transform_0(%arg0: i32, %arg1: i32) -> (i32, i32, i32) {
    %c1_i32 = arith.constant 1 : i32
    %0 = arith.muli %arg0, %c1_i32 : i32
    %1 = arith.addi %0, %arg1 : i32
    %c0_i32 = arith.constant 0 : i32
    %c0_i32_0 = arith.constant 0 : i32
    %c0_i32_1 = arith.constant 0 : i32
    return %1, %c0_i32, %c0_i32_0 : i32, i32, i32
  }
  func.func @transform_1(%arg0: i32, %arg1: i32) -> (i32, i32, i32) {
    %c0_i32 = arith.constant 0 : i32
    %c0_i32_0 = arith.constant 0 : i32
    %c0_i32_1 = arith.constant 0 : i32
    return %arg0, %c0_i32, %c0_i32_0 : i32, i32, i32
  }
  func.func @transform_2(%arg0: i32, %arg1: i32) -> (i32, i32, i32) {
    %c0_i32 = arith.constant 0 : i32
    %c0_i32_0 = arith.constant 0 : i32
    %c0_i32_1 = arith.constant 0 : i32
    return %arg0, %c0_i32, %c0_i32_0 : i32, i32, i32
  }
}

</mosaic_0001>

<bundles_post_ra>
// kernel: tpu_custom_call.1
= control target key start
LH: loop header
LB: loop body
LE: loop exit
PB: predicated region body
PF: predicated region fallthrough
CT: control target
= control target key end

     0   :  { %8 = vsyncpa [#allocation5], 0  ;;  %s665_s0 = inlined_call_operand.hbm [shape: f32[8,16,128], index: 0, kind: input, shape index: {}]   ;;  %s666_s1 = inlined_call_operand.hbm [shape: f32[1,1,1], index: 1, kind: output, shape index: {0}]   ;;  %s667_s2 = inlined_call_operand.hbm [shape: f32[1,1,1], index: 2, kind: output, shape index: {1}]  }
   0x1   :  { %9 = vsyncpa [#allocation6], 0 }
   0x2   :  { %10 = vsyncpa [#allocation9], 0  ;;  %s20_s11 = sshll.u32 %s665_s0, 4  ;;  %s427_s12 = smov [#allocation4]   ;;  %s21_s11 = int_to_ptr.hbm [resolvable:$true] %s20_s11 }
   0x3   :  { %s22_s13 = sshll.u32 %s427_s12, 4  ;;  %s428_s14 = smov 128   ;;  %s23_s13 = int_to_ptr.vmem [resolvable:$true] %s22_s13 }
   0x4   :  { %s429_s15 = smov 8  }
   0x5   :  { %28 = dma.hbm_to_vmem [thread:$0]  %s21_s11, 2048, %s23_s13, [#allocation5], %s428_s14, %s428_s14, %s429_s15  }
   0x6   :  { %421 = dma.done.wait [#allocation5], 2048  }
   0x7   :  { %422 = vsyncadd [#allocation5], 4294965248  ;;  %v57_v0 = vlaneseq  ;;  %v452_v1 = vld [vmem:[#allocation4] sm:$0xff]  ;;  %v454_v2 = vld [vmem:[#allocation4 + $0x10] sm:$0xff]  ;;  %s430_s16 = smov 1   ;;  %v431_v23 = vmov 0.0  }
   0x8   :  { %130 = vrot.lane.b32.xlu0 %v452_v1, %s430_s16  ;;  %134 = vrot.lane.b32.xlu1 %v454_v2, %s430_s16  ;;  %v463_v4 = vld [vmem:[#allocation4 + $0x8] sm:$0xff]  ;;  %v66_v5 = vrot.slane %v454_v2, 7  ;;  %v467_v7 = vld [vmem:[#allocation4 + $0x20] sm:$0xff]  ;;  %v64_v8 = vrot.slane %v452_v1, 7  ;;  %v473_v9 = vld [vmem:[#allocation4 + $0x18] sm:$0xff]  ;;  %vm278_vm3 = vcmask 1040384  }
   0x9   :  { %v457_v3 = vshrl.u32 %v57_v0, 7  ;;  %v65_v6 = vrot.slane %v463_v4, 7  ;;  %138 = vrot.lane.b32.xlu2 %v467_v7, %s430_s16  ;;  %v67_v11 = vrot.slane %v473_v9, 7  ;;  %v68_v12 = vrot.slane %v467_v7, 7  ;;  %v481_v14 = vld [vmem:[#allocation4 + $0x28] sm:$0xff]  ;;  %v483_v15 = vld [vmem:[#allocation4 + $0x78] sm:$0xff] }
   0xa   :  { %v490_v17 = vld [vmem:[#allocation4 + $0x30] sm:$0xff]  ;;  %v79_v18 = vrot.slane %v483_v15, 7  ;;  %v69_v22 = vrot.slane %v481_v14, 7  ;;  %39 = vst [vmem:[#allocation2] sm:$0x1] %v431_v23  ;;  %v503_v25 = vld [vmem:[#allocation4 + $0x38] sm:$0xff] }
   0xb   :  { %vm80_vm0 = vcmp.lt.s32.totalorder %v457_v3, 1  ;;  %v70_v20 = vrot.slane %v490_v17, 7  ;;  %vm62_vm1 = vcmp.ge.s32.totalorder %v457_v3, 1  ;;  %40 = vst [vmem:[#allocation3] sm:$0x1] %v431_v23  ;;  %v71_v28 = vrot.slane %v503_v25, 7 }
   0xc   :  { %v94_v10 = vsel %vm80_vm0, %v65_v6, %v66_v5  ;;  %v95_v13 = vsel %vm80_vm0, %v64_v8, %v65_v6  ;;  %v92_v21 = vsel %vm80_vm0, %v67_v11, %v68_v12  ;;  %v93_v24 = vsel %vm80_vm0, %v66_v5, %v67_v11  ;;  %v514_v31 = vld [vmem:[#allocation4 + $0x40] sm:$0xff]  ;;  %v520_v36 = vld [vmem:[#allocation4 + $0x48] sm:$0xff]  ;;  %v527_v41 = vld [vmem:[#allocation4 + $0x50] sm:$0xff]  ;;  %s432_s0 = smov [#allocation7]   ;;  %s312_s20 = sshll.u32 %s666_s1, 4  ;;  %s313_s20 = int_to_ptr.hbm [resolvable:$true] %s312_s20 }
   0xd   :  { %v99_v16 = vsub.f32 %v454_v2, %v94_v10  ;;  %v98_v19 = vsub.f32 %v463_v4, %v95_v13  ;;  %v96_v26 = vsel %vm80_vm0, %v79_v18, %v64_v8  ;;  %v101_v29 = vsub.f32 %v467_v7, %v92_v21  ;;  %v547_v55 = vld [vmem:[#allocation4 + $0x60] sm:$0xff]  ;;  %v552_v58 = vld [vmem:[#allocation4 + $0x58] sm:$0xff]  ;;  %v558_v5 = vld [vmem:[#allocation4 + $0x68] sm:$0xff]  ;;  %s310_s17 = sshll.u32 %s432_s0, 4  ;;  %s433_s22 = smov [#allocation8]   ;;  %s311_s17 = int_to_ptr.vmem [resolvable:$true] %s310_s17 }
   0xe   :  { %v97_v30 = vsub.f32 %v452_v1, %v96_v26  ;;  %v100_v33 = vsub.f32 %v473_v9, %v93_v24  ;;  %v90_v34 = vsel %vm80_vm0, %v69_v22, %v70_v20  ;;  %v72_v35 = vrot.slane %v514_v31, 7  ;;  %s321_s23 = sshll.u32 %s433_s22, 4  ;;  %s323_s26 = sshll.u32 %s667_s2, 4  ;;  %s322_s23 = int_to_ptr.vmem [resolvable:$true] %s321_s23  ;;  %s324_s26 = int_to_ptr.hbm [resolvable:$true] %s323_s26 }
   0xf   :  { %v115_v27 = vsel %vm62_vm1, %v99_v16, 0.0  ;;  %v196_v32 = vmul.f32 %v98_v19, %v98_v19  ;;  %v91_v37 = vsel %vm80_vm0, %v68_v12, %v69_v22  ;;  %v73_v40 = vrot.slane %v520_v36, 7  ;;  %v568_v16 = vld [vmem:[#allocation4 + $0x70] sm:$0xff] }
  0x10   :  { %132 = vrot.lane.b32.xlu0 %v463_v4, %s430_s16  ;;  %136 = vrot.lane.b32.xlu1 %v473_v9, %s430_s16  ;;  %v113_v38 = vsel %vm62_vm1, %v97_v30, 0.0  ;;  %v197_v39 = vmul.f32 %v115_v27, %v115_v27  ;;  %v89_v43 = vsel %vm80_vm0, %v70_v20, %v71_v28  ;;  %v74_v44 = vrot.slane %v527_v41, 7 }
  0x11   :  { %140 = vrot.lane.b32.xlu2 %v481_v14, %s430_s16  ;;  %v195_v42 = vmul.f32 %v113_v38, %v113_v38  ;;  %v117_v45 = vsel %vm62_vm1, %v101_v29, 0.0  ;;  %v103_v46 = vsub.f32 %v490_v17, %v90_v34  ;;  %v198_v47 = vmul.f32 %v100_v33, %v100_v33  ;;  %v194_v3 = vld [vmem:[#allocation2] sm:$0x1] }
  0x12   :  { %v102_v48 = vsub.f32 %v481_v14, %v91_v37  ;;  %v88_v50 = vsel %vm80_vm0, %v71_v28, %v72_v35  ;;  %v199_v51 = vmul.f32 %v117_v45, %v117_v45  ;;  %v104_v53 = vsub.f32 %v503_v25, %v89_v43 }
  0x13   :  { %v211_v49 = vadd.f32 %v196_v32, %v195_v42  ;;  %v86_v54 = vsel %vm80_vm0, %v73_v40, %v74_v44  ;;  %v119_v56 = vsel %vm62_vm1, %v103_v46, 0.0  ;;  %v105_v57 = vsub.f32 %v514_v31, %v88_v50 }
  0x14   :  { %v76_v59 = vrot.slane %v547_v55, 7  ;;  %v200_v60 = vmul.f32 %v102_v48, %v102_v48  ;;  %v75_v62 = vrot.slane %v552_v58, 7  ;;  %v87_v63 = vsel %vm80_vm0, %v72_v35, %v73_v40 }
  0x15   :  { %v212_v52 = vadd.f32 %v211_v49, %v197_v39  ;;  %v201_v6 = vmul.f32 %v119_v56, %v119_v56  ;;  %v202_v10 = vmul.f32 %v104_v53, %v104_v53  ;;  %v107_v11 = vsub.f32 %v527_v41, %v86_v54 }
  0x16   :  { %v77_v12 = vrot.slane %v558_v5, 7  ;;  %v121_v13 = vsel %vm62_vm1, %v105_v57, 0.0  ;;  %v106_v19 = vsub.f32 %v520_v36, %v87_v63  ;;  %v84_v21 = vsel %vm80_vm0, %v75_v62, %v76_v59 }
  0x17   :  { %v213_v61 = vadd.f32 %v212_v52, %v198_v47  ;;  %v78_v22 = vrot.slane %v568_v16, 7  ;;  %v85_v23 = vsel %vm80_vm0, %v74_v44, %v75_v62  ;;  %v203_v24 = vmul.f32 %v121_v13, %v121_v13 }
  0x18   :  { %142 = vrot.lane.b32.xlu0 %v490_v17, %s430_s16  ;;  %144 = vrot.lane.b32.xlu1 %v503_v25, %s430_s16  ;;  %v123_v27 = vsel %vm62_vm1, %v107_v11, 0.0  ;;  %v109_v28 = vsub.f32 %v547_v55, %v84_v21  ;;  %v204_v29 = vmul.f32 %v106_v19, %v106_v19  ;;  %v108_v32 = vsub.f32 %v552_v58, %v85_v23 }
  0x19   :  { %146 = vrot.lane.b32.xlu2 %v514_v31, %s430_s16  ;;  %v214_v8 = vadd.f32 %v213_v61, %v199_v51  ;;  %v82_v33 = vsel %vm80_vm0, %v77_v12, %v78_v22  ;;  %v83_v34 = vsel %vm80_vm0, %v76_v59, %v77_v12  ;;  %v205_v35 = vmul.f32 %v123_v27, %v123_v27 }
  0x1a   :  { %v125_v38 = vsel %vm62_vm1, %v109_v28, 0.0  ;;  %v111_v39 = vsub.f32 %v568_v16, %v82_v33  ;;  %v110_v40 = vsub.f32 %v558_v5, %v83_v34  ;;  %v206_v43 = vmul.f32 %v108_v32, %v108_v32 }
  0x1b   :  { %v215_v20 = vadd.f32 %v214_v8, %v200_v60  ;;  %v81_v44 = vsel %vm80_vm0, %v78_v22, %v79_v18  ;;  %v207_v45 = vmul.f32 %v125_v38, %v125_v38  ;;  %v606_v13 = vand.u32 127, %v57_v0 }
  0x1c   :  { %v127_v47 = vsel %vm62_vm1, %v111_v39, 0.0  ;;  %v208_v48 = vmul.f32 %v110_v40, %v110_v40  ;;  %v112_v50 = vsub.f32 %v483_v15, %v81_v44  ;;  %vm290_vm4 = vcmask 0  }
  0x1d   :  { %v216_v26 = vadd.f32 %v215_v20, %v201_v6  ;;  %v209_v52 = vmul.f32 %v127_v47, %v127_v47  ;;  %vm129_vm2 = vcmp.ge.s32.totalorder %v606_v13, 1 }
  0x1e   :  { %v210_v53 = vmul.f32 %v112_v50, %v112_v50 }
  0x1f   :  { %v217_v30 = vadd.f32 %v216_v26, %v202_v10 }
  0x20   :  { %148 = vrot.lane.b32.xlu0 %v520_v36, %s430_s16  ;;  %150 = vrot.lane.b32.xlu1 %v527_v41, %s430_s16 }
  0x21   :  { %152 = vrot.lane.b32.xlu2 %v552_v58, %s430_s16  ;;  %v218_v37 = vadd.f32 %v217_v30, %v203_v24 }
  0x23   :  { %v219_v42 = vadd.f32 %v218_v37, %v204_v29 }
  0x25   :  { %v220_v46 = vadd.f32 %v219_v42, %v205_v35 }
  0x27   :  { %v221_v49 = vadd.f32 %v220_v46, %v206_v43 }
  0x28   :  { %154 = vrot.lane.b32.xlu0 %v547_v55, %s430_s16  ;;  %156 = vrot.lane.b32.xlu1 %v558_v5, %s430_s16 }
  0x29   :  { %158 = vrot.lane.b32.xlu2 %v568_v16, %s430_s16  ;;  %v222_v51 = vadd.f32 %v221_v49, %v207_v45 }
  0x2b   :  { %v223_v54 = vadd.f32 %v222_v51, %v208_v48 }
  0x2d   :  { %v224_v18 = vadd.f32 %v223_v54, %v209_v52 }
  0x2f   :  { %v225_v56 = vadd.f32 %v224_v18, %v210_v53 }
  0x30   :  { %160 = vrot.lane.b32.xlu0 %v483_v15, %s430_s16 }
  0x31   :  { %v226_v57 = vrot.slane %v225_v56, 4 }
  0x33   :  { %v227_v59 = vadd.f32 %v226_v57, %v225_v56 }
  0x35   :  { %v228_v60 = vrot.slane %v227_v59, 2 }
  0x37   :  { %v229_v61 = vadd.f32 %v228_v60, %v227_v59 }
  0x39   :  { %v230_v62 = vrot.slane %v229_v61, 1 }
  0x3b   :  { %v231_v63 = vadd.f32 %v230_v62, %v229_v61 }
  0x3d   :  { %v232_v6 = vadd.f32 %v231_v63, %v194_v3 }
  0x3f   :  { %233 = vst [vmem:[#allocation2] sm:$0x1] %v232_v6 }
  0x63   :  { %v139_v8 = vpop.permute.xlu2 %138 }
  0x64   :  { %v166_v28 = vsub.f32 %v467_v7, %v139_v8 }
  0x6b   :  { %v141_v10 = vpop.permute.xlu2 %140 }
  0x6c   :  { %v167_v32 = vsub.f32 %v481_v14, %v141_v10 }
  0x6e   :  { %v183_v7 = vsel %vm129_vm2, %v167_v32, 0.0 }
  0x6f   :  { %v240_v46 = vmul.f32 %v183_v7, %v183_v7 }
  0x73   :  { %v147_v27 = vpop.permute.xlu2 %146 }
  0x74   :  { %v170_v42 = vsub.f32 %v514_v31, %v147_v27 }
  0x76   :  { %v186_v49 = vsel %vm129_vm2, %v170_v42, 0.0 }
  0x77   :  { %v243_v52 = vmul.f32 %v186_v49, %v186_v49 }
  0x7a   :  { %v131_v11 = vpop.permute.xlu0 %130  ;;  %v135_v12 = vpop.permute.xlu1 %134 }
  0x7b   :  { %v162_v19 = vsub.f32 %v452_v1, %v131_v11  ;;  %v164_v20 = vsub.f32 %v454_v2, %v135_v12  ;;  %v153_v48 = vpop.permute.xlu2 %152 }
  0x7c   :  { %v173_v56 = vsub.f32 %v552_v58, %v153_v48 }
  0x7d   :  { %v178_v23 = vsel %vm129_vm2, %v162_v19, 0.0  ;;  %v180_v0 = vsel %vm129_vm2, %v164_v20, 0.0 }
  0x7e   :  { %v235_v29 = vmul.f32 %v178_v23, %v178_v23  ;;  %v237_v33 = vmul.f32 %v180_v0, %v180_v0  ;;  %v189_v63 = vsel %vm129_vm2, %v173_v56, 0.0 }
  0x7f   :  { %v246_v10 = vmul.f32 %v189_v63, %v189_v63 }
  0x82   :  { %v133_v21 = vpop.permute.xlu0 %132  ;;  %v137_v22 = vpop.permute.xlu1 %136 }
  0x83   :  { %v163_v24 = vsub.f32 %v463_v4, %v133_v21  ;;  %v165_v26 = vsub.f32 %v473_v9, %v137_v22  ;;  %v182_v9 = vsel %vm129_vm2, %v166_v28, 0.0  ;;  %v159_v8 = vpop.permute.xlu2 %158 }
  0x84   :  { %v239_v43 = vmul.f32 %v182_v9, %v182_v9  ;;  %v176_v21 = vsub.f32 %v568_v16, %v159_v8 }
  0x85   :  { %v179_v1 = vsel %vm129_vm2, %v163_v24, 0.0  ;;  %v181_v2 = vsel %vm129_vm2, %v165_v26, 0.0 }
  0x86   :  { %v236_v30 = vmul.f32 %v179_v1, %v179_v1  ;;  %v238_v34 = vmul.f32 %v181_v2, %v181_v2  ;;  %v192_v0 = vsel %vm129_vm2, %v176_v21, 0.0 }
  0x87   :  { %v249_v2 = vmul.f32 %v192_v0, %v192_v0 }
  0x88   :  { %v251_v4 = vadd.f32 %v236_v30, %v235_v29 }
  0x8a   :  { %v252_v35 = vadd.f32 %v251_v4, %v237_v33  ;;  %v143_v37 = vpop.permute.xlu0 %142  ;;  %v145_v38 = vpop.permute.xlu1 %144 }
  0x8b   :  { %v168_v39 = vsub.f32 %v490_v17, %v143_v37  ;;  %v169_v40 = vsub.f32 %v503_v25, %v145_v38  ;;  %v234_v37 = vld [vmem:[#allocation3] sm:$0x1] }
  0x8c   :  { %v253_v14 = vadd.f32 %v252_v35, %v238_v34 }
  0x8d   :  { %v184_v44 = vsel %vm129_vm2, %v168_v39, 0.0  ;;  %v185_v45 = vsel %vm129_vm2, %v169_v40, 0.0 }
  0x8e   :  { %v254_v47 = vadd.f32 %v253_v14, %v239_v43  ;;  %v241_v17 = vmul.f32 %v184_v44, %v184_v44  ;;  %v242_v51 = vmul.f32 %v185_v45, %v185_v45 }
  0x90   :  { %v255_v50 = vadd.f32 %v254_v47, %v240_v46 }
  0x92   :  { %v256_v25 = vadd.f32 %v255_v50, %v241_v17  ;;  %v149_v31 = vpop.permute.xlu0 %148  ;;  %v151_v53 = vpop.permute.xlu1 %150 }
  0x93   :  { %v171_v54 = vsub.f32 %v520_v36, %v149_v31  ;;  %v172_v18 = vsub.f32 %v527_v41, %v151_v53  ;;  %v277_v36 = vld [vmem:[#allocation2] sm:$0x1] }
  0x94   :  { %v257_v57 = vadd.f32 %v256_v25, %v242_v51  ;;  %v279_v41 = vsel %vm278_vm3, %v277_v36, 0.0 }
  0x95   :  { %v187_v59 = vsel %vm129_vm2, %v171_v54, 0.0  ;;  %v188_v60 = vsel %vm129_vm2, %v172_v18, 0.0  ;;  %280 = vadd.xlane.f32.xlu1 %v279_v41 }
  0x96   :  { %v258_v61 = vadd.f32 %v257_v57, %v243_v52  ;;  %v244_v62 = vmul.f32 %v187_v59, %v187_v59  ;;  %v245_v3 = vmul.f32 %v188_v60, %v188_v60 }
  0x98   :  { %v259_v6 = vadd.f32 %v258_v61, %v244_v62 }
  0x9a   :  { %v260_v58 = vadd.f32 %v259_v6, %v245_v3  ;;  %v155_v11 = vpop.permute.xlu0 %154  ;;  %v157_v12 = vpop.permute.xlu1 %156 }
  0x9b   :  { %v174_v19 = vsub.f32 %v547_v55, %v155_v11  ;;  %v175_v20 = vsub.f32 %v558_v5, %v157_v12 }
  0x9c   :  { %v261_v24 = vadd.f32 %v260_v58, %v246_v10 }
  0x9d   :  { %v190_v22 = vsel %vm129_vm2, %v174_v19, 0.0  ;;  %v191_v23 = vsel %vm129_vm2, %v175_v20, 0.0 }
  0x9e   :  { %v247_v26 = vmul.f32 %v190_v22, %v190_v22  ;;  %v248_v27 = vmul.f32 %v191_v23, %v191_v23 }
  0xa0   :  { %v262_v28 = vadd.f32 %v261_v24, %v247_v26 }
  0xa2   :  { %v263_v1 = vadd.f32 %v262_v28, %v248_v27  ;;  %v161_v55 = vpop.permute.xlu0 %160 }
  0xa3   :  { %v177_v5 = vsub.f32 %v483_v15, %v161_v55 }
  0xa4   :  { %v264_v29 = vadd.f32 %v263_v1, %v249_v2 }
  0xa5   :  { %v193_v16 = vsel %vm129_vm2, %v177_v5, 0.0 }
  0xa6   :  { %v250_v30 = vmul.f32 %v193_v16, %v193_v16 }
  0xa8   :  { %v265_v32 = vadd.f32 %v264_v29, %v250_v30 }
  0xaa   :  { %v266_v33 = vrot.slane %v265_v32, 4 }
  0xac   :  { %v267_v4 = vadd.f32 %v266_v33, %v265_v32 }
  0xae   :  { %v268_v34 = vrot.slane %v267_v4, 2 }
  0xb0   :  { %v269_v9 = vadd.f32 %v268_v34, %v267_v4 }
  0xb2   :  { %v270_v35 = vrot.slane %v269_v9, 1 }
  0xb4   :  { %v271_v38 = vadd.f32 %v270_v35, %v269_v9 }
  0xb6   :  { %v272_v7 = vadd.f32 %v271_v38, %v234_v37 }
  0xb8   :  { %273 = vst [vmem:[#allocation3] sm:$0x1] %v272_v7 }
  0xbf   :  { %v292_v39 = vld [vmem:[#allocation3] sm:$0x1] }
  0xc0   :  { %v293_v40 = vsel %vm278_vm3, %v292_v39, 0.0 }
  0xc1   :  { %294 = vadd.xlane.f32.xlu2 %v293_v40 }
 0x108   :  { %v281_v15 = vpop.xlane.xlu1 %280 }
 0x109   :  { %v282_v42 = vrot.slane %v281_v15, 4 }
 0x10b   :  { %v283_v13 = vadd.f32 %v282_v42, %v281_v15 }
 0x10d   :  { %v284_v43 = vrot.slane %v283_v13, 2 }
 0x10f   :  { %v285_v14 = vadd.f32 %v284_v43, %v283_v13 }
 0x111   :  { %v286_v44 = vrot.slane %v285_v14, 1 }
 0x113   :  { %v287_v45 = vadd.f32 %v286_v44, %v285_v14 }
 0x115   :  { %338 = vpush %v287_v45 }
 0x134   :  { %v295_v46 = vpop.xlane.xlu2 %294 }
 0x135   :  { %v296_v47 = vrot.slane %v295_v46, 4 }
 0x137   :  { %v297_v48 = vadd.f32 %v296_v47, %v295_v46 }
 0x139   :  { %v298_v49 = vrot.slane %v297_v48, 2 }
 0x13b   :  { %v299_v50 = vadd.f32 %v298_v49, %v297_v48 }
 0x13d   :  { %v300_v17 = vrot.slane %v299_v50, 1 }
 0x13f   :  { %v301_v51 = vadd.f32 %v300_v17, %v299_v50 }
 0x141   :  { %340 = vpush %v301_v51 }
 0x146   :  { %s339_s21 = spop %338 }
 0x147   :  { %v289_v25 = vstv %s339_s21 }
 0x148   :  { %291 = vst.msk [vmem:[#allocation7] sm:$0x1] %vm290_vm4, %v289_v25 }
 0x149   :  { %315 = dma.vmem_to_hbm [thread:$0]  %s311_s17, 16, %s313_s20, [#allocation6]  }
 0x172   :  { %s341_s27 = spop %340 }
 0x173   :  { %v303_v52 = vstv %s341_s27 }
 0x174   :  { %304 = vst.msk [vmem:[#allocation8] sm:$0x1] %vm290_vm4, %v303_v52 }
 0x175   :  { %326 = dma.vmem_to_hbm [thread:$0]  %s322_s23, 16, %s324_s26, [#allocation9]  }
 0x176   :  { %423 = dma.done.wait [#allocation6], 16  }
 0x177   :  { %424 = vsyncadd [#allocation6], 4294967280 }
 0x178   :  { %425 = dma.done.wait [#allocation9], 16  }
 0x179   :  { %426 = vsyncadd [#allocation9], 4294967280 }
 0x17a   :  { %335 = vsyncpa [#allocation5], 1 }
 0x17b   :  { %336 = vsyncpa [#allocation6], 1 }
 0x17c   :  { %337 = vsyncpa [#allocation9], 1 }

</bundles_post_ra>
